<compile_context>
chip_gen: v7x
topology: tpu7x:2x2x1
jax: 0.10.0
libtpu: 0.0.40
codegen_flags: <defaults>
</compile_context>

<pallas_src>
import jax
import jax.numpy as jnp
from jax.experimental import pallas as pl
from jax.experimental.pallas import tpu as pltpu

LANE = 128
SUBLANE = 8
H1, H2, H3 = 256, 128, 64
TB_MAX = 512  # batch tile (raised from 256 per perf review)


def _round_up(n, m):
    return ((n + m - 1) // m) * m


def _pad2d(a, rows, cols):
    r, c = a.shape
    return jnp.pad(a, ((0, rows - r), (0, cols - c)))


def _mlp_kernel(x_ref,
                w1_ref, b1_ref,
                w2_ref, b2_ref,
                w3_ref, b3_ref,
                w4_ref, b4_ref,
                out_ref):
    """One batch tile; all weights VMEM-resident.

    bf16 MXU inputs (x cast in-kernel on the VPU), f32 accumulation,
    f32 bias/ReLU math, bf16 lane-dense output store.
    """
    x = x_ref[...].astype(jnp.bfloat16)
    # fc1 + ReLU
    h = jnp.dot(x, w1_ref[...],
                preferred_element_type=jnp.float32) + b1_ref[...]
    h = jnp.maximum(h, 0.0)
    # fc2 + ReLU
    h = jnp.dot(h.astype(jnp.bfloat16), w2_ref[...],
                preferred_element_type=jnp.float32) + b2_ref[...]
    h = jnp.maximum(h, 0.0)
    # fc3 + ReLU (width padded 64 -> 128; pad lanes are exactly zero)
    h = jnp.dot(h.astype(jnp.bfloat16), w3_ref[...],
                preferred_element_type=jnp.float32) + b3_ref[...]
    h = jnp.maximum(h, 0.0)
    # fc4 (output padded to 128 lanes -> unmasked lane-dense store)
    h = jnp.dot(h.astype(jnp.bfloat16), w4_ref[...],
                preferred_element_type=jnp.float32) + b4_ref[...]
    out_ref[...] = h.astype(out_ref.dtype)


def init_params(key, input_size, output_size):
    """PyTorch nn.Linear-like init: U(-1/sqrt(fan_in), 1/sqrt(fan_in)).
    Weights stored [in, out] (transposed from PyTorch's [out, in]), f32."""
    dims = [(input_size, H1), (H1, H2), (H2, H3), (H3, output_size)]
    params = {}
    for i, (fan_in, fan_out) in enumerate(dims, start=1):
        key, kw, kb = jax.random.split(key, 3)
        bound = 1.0 / float(fan_in) ** 0.5
        params[f"w{i}"] = jax.random.uniform(
            kw, (fan_in, fan_out), jnp.float32, -bound, bound)
        params[f"b{i}"] = jax.random.uniform(
            kb, (1, fan_out), jnp.float32, -bound, bound)
    return params


def prepare_params(params, input_size, output_size):
    """Bake lane-aligned zero padding + bf16 weights once (offline)."""
    h3p = _round_up(H3, LANE)             # 64 -> 128
    outp = _round_up(output_size, LANE)   # e.g. 4 -> 128
    return {
        "w1": params["w1"].astype(jnp.bfloat16),         # [K, 256] (full K)
        "b1": params["b1"],                              # f32 [1, 256]
        "w2": params["w2"].astype(jnp.bfloat16),         # [256, 128]
        "b2": params["b2"],                              # f32 [1, 128]
        "w3": _pad2d(params["w3"], H2, h3p).astype(jnp.bfloat16),
        "b3": _pad2d(params["b3"], 1, h3p),              # f32 [1, 128]
        "w4": _pad2d(params["w4"], h3p, outp).astype(jnp.bfloat16),
        "b4": _pad2d(params["b4"], 1, outp),             # f32 [1, 128]
    }


def text_classifier_forward(x, pparams, output_size):
    """x: [B, input_size] f32. Returns [B, output_size] f32 logits."""
    B, K = x.shape
    outp = pparams["w4"].shape[1]

    # Batch tile: up to 512 rows per grid step; smaller batches use a single
    # ragged tile (Pallas masks the boundary block, rows are independent).
    TB = min(TB_MAX, _round_up(B, SUBLANE))
    grid = (pl.cdiv(B, TB),)

    w1, b1 = pparams["w1"], pparams["b1"]
    w2, b2 = pparams["w2"], pparams["b2"]
    w3, b3 = pparams["w3"], pparams["b3"]
    w4, b4 = pparams["w4"], pparams["b4"]
    operands = (x, w1, b1, w2, b2, w3, b3, w4, b4)

    def resident(arr):
        # Full-array block; same block index every grid step -> stays in VMEM.
        return pl.BlockSpec(arr.shape, lambda i: (0,) * arr.ndim)

    flops = 2 * B * (K * H1 + H1 * H2 + H2 * w3.shape[1]
                     + w3.shape[1] * outp)
    bytes_accessed = sum(int(a.size) * a.dtype.itemsize for a in operands)
    bytes_accessed += B * outp * 2  # bf16 output

    out = pl.pallas_call(
        _mlp_kernel,
        out_shape=jax.ShapeDtypeStruct((B, outp), jnp.bfloat16),
        grid=grid,
        in_specs=[pl.BlockSpec((TB, K), lambda i: (i, 0)),   # K == full dim
                  resident(w1), resident(b1),
                  resident(w2), resident(b2),
                  resident(w3), resident(b3),
                  resident(w4), resident(b4)],
        out_specs=pl.BlockSpec((TB, outp), lambda i: (i, 0)),
        compiler_params=pltpu.CompilerParams(
            dimension_semantics=("parallel",)),
        cost_estimate=pl.CostEstimate(flops=flops, transcendentals=0,
                                      bytes_accessed=bytes_accessed),
    )(*operands)

    return out[:, :output_size].astype(jnp.float32)


def reference_forward_bf16(x, pparams, output_size):
    """Pure-JAX reference mirroring the kernel math (bf16 dot inputs, f32
    accumulation / bias / ReLU, bf16 output rounding)."""
    h = jnp.maximum(jnp.dot(x.astype(jnp.bfloat16), pparams["w1"],
                            preferred_element_type=jnp.float32)
                    + pparams["b1"], 0.0)
    h = jnp.maximum(jnp.dot(h.astype(jnp.bfloat16), pparams["w2"],
                            preferred_element_type=jnp.float32)
                    + pparams["b2"], 0.0)
    h = jnp.maximum(jnp.dot(h.astype(jnp.bfloat16), pparams["w3"],
                            preferred_element_type=jnp.float32)
                    + pparams["b3"], 0.0)
    h = jnp.dot(h.astype(jnp.bfloat16), pparams["w4"],
                preferred_element_type=jnp.float32) + pparams["b4"]
    h = h.astype(jnp.bfloat16).astype(jnp.float32)
    return h[:, :output_size]


def reference_forward_f32(x, params):
    """Exact PyTorch-semantics f32 reference (no quantization)."""
    h = jnp.maximum(x @ params["w1"] + params["b1"], 0.0)
    h = jnp.maximum(h @ params["w2"] + params["b2"], 0.0)
    h = jnp.maximum(h @ params["w3"] + params["b3"], 0.0)
    return h @ params["w4"] + params["b4"]


if __name__ == "__main__":
    # GloVe-flavoured small shapes: batch=8, input_size=300, 4 classes.
    batch, input_size, output_size = 8, 300, 4

    key = jax.random.PRNGKey(0)
    key, kx = jax.random.split(key)
    x = jax.random.normal(kx, (batch, input_size), jnp.float32)

    params = init_params(key, input_size, output_size)
    pparams = prepare_params(params, input_size, output_size)

    out = text_classifier_forward(x, pparams, output_size)
    out = jax.block_until_ready(out)
    assert out.shape == (batch, output_size)

    # Check against a reference with identical bf16/f32 mixed-precision math.
    ref_bf16 = reference_forward_bf16(x, pparams, output_size)
    assert jnp.allclose(out, ref_bf16, atol=1e-2, rtol=1e-2), \
        "mismatch vs bf16-mirrored reference"

    # Loose check against the unquantized f32 PyTorch-semantics reference.
    ref_f32 = reference_forward_f32(x, params)
    assert jnp.allclose(out, ref_f32, atol=5e-2, rtol=5e-2), \
        "mismatch vs f32 reference"

    # Exercise the multi-step grid + ragged boundary block path.
    key, kx2 = jax.random.split(key)
    x_big = jax.random.normal(kx2, (520, input_size), jnp.float32)
    out_big = jax.block_until_ready(
        text_classifier_forward(x_big, pparams, output_size))
    ref_big = reference_forward_bf16(x_big, pparams, output_size)
    assert out_big.shape == (520, output_size)
    assert jnp.allclose(out_big, ref_big, atol=1e-2, rtol=1e-2), \
        "mismatch vs bf16-mirrored reference (tiled path)"

    print("KERNEL_OK")
</pallas_src>

<mosaic_0001>
module attributes {stable_mosaic.version = 11 : i64} {
  func.func @_mlp_kernel(%arg0: i32, %arg1: memref<8x300xf32, #tpu.memory_space<vmem>>, %arg2: memref<300x256xbf16, #tpu.memory_space<vmem>>, %arg3: memref<1x256xf32, #tpu.memory_space<vmem>>, %arg4: memref<256x128xbf16, #tpu.memory_space<vmem>>, %arg5: memref<1x128xf32, #tpu.memory_space<vmem>>, %arg6: memref<128x128xbf16, #tpu.memory_space<vmem>>, %arg7: memref<1x128xf32, #tpu.memory_space<vmem>>, %arg8: memref<128x128xbf16, #tpu.memory_space<vmem>>, %arg9: memref<1x128xf32, #tpu.memory_space<vmem>>, %arg10: memref<8x128xbf16, #tpu.memory_space<vmem>>) attributes {dimension_semantics = [#tpu.dimension_semantics<parallel>], iteration_bounds = array<i64: 1>, scalar_prefetch = 0 : i64, scratch_operands = 0 : i64, tpu.core_type = #tpu.core_type<tc>, window_params = [{transform_indices = @transform_0, window_bounds = array<i64: 8, 300>}, {pipeline_mode = #tpu.pipeline_mode<synchronous>, transform_indices = @transform_1, window_bounds = array<i64: 300, 256>}, {pipeline_mode = #tpu.pipeline_mode<synchronous>, transform_indices = @transform_2, window_bounds = array<i64: 1, 256>}, {pipeline_mode = #tpu.pipeline_mode<synchronous>, transform_indices = @transform_3, window_bounds = array<i64: 256, 128>}, {pipeline_mode = #tpu.pipeline_mode<synchronous>, transform_indices = @transform_4, window_bounds = array<i64: 1, 128>}, {pipeline_mode = #tpu.pipeline_mode<synchronous>, transform_indices = @transform_5, window_bounds = array<i64: 128, 128>}, {pipeline_mode = #tpu.pipeline_mode<synchronous>, transform_indices = @transform_6, window_bounds = array<i64: 1, 128>}, {pipeline_mode = #tpu.pipeline_mode<synchronous>, transform_indices = @transform_7, window_bounds = array<i64: 128, 128>}, {pipeline_mode = #tpu.pipeline_mode<synchronous>, transform_indices = @transform_8, window_bounds = array<i64: 1, 128>}, {transform_indices = @transform_9, window_bounds = array<i64: 8, 128>}]} {
    %c0 = arith.constant 0 : index
    %c0_0 = arith.constant 0 : index
    %0 = vector.load %arg1[%c0, %c0_0] : memref<8x300xf32, #tpu.memory_space<vmem>>, vector<8x300xf32>
    %1 = arith.truncf %0 : vector<8x300xf32> to vector<8x300xbf16>
    %c0_1 = arith.constant 0 : index
    %c0_2 = arith.constant 0 : index
    %2 = vector.load %arg2[%c0_1, %c0_2] : memref<300x256xbf16, #tpu.memory_space<vmem>>, vector<300x256xbf16>
    %cst = arith.constant dense<0.000000e+00> : vector<8x256xf32>
    %3 = tpu.matmul %1, %2, %cst {dimension_numbers = #tpu.dot_dimension_numbers<[1], [0], [0], [1], [0, 0, 1, 1], [], []>} : vector<8x300xbf16>, vector<300x256xbf16>, vector<8x256xf32> -> vector<8x256xf32>
    %c0_3 = arith.constant 0 : index
    %c0_4 = arith.constant 0 : index
    %4 = vector.load %arg3[%c0_3, %c0_4] : memref<1x256xf32, #tpu.memory_space<vmem>>, vector<1x256xf32>
    %5 = vector.broadcast %4 : vector<1x256xf32> to vector<8x256xf32>
    %6 = arith.addf %3, %5 : vector<8x256xf32>
    %cst_5 = arith.constant 0.000000e+00 : f32
    %7 = vector.broadcast %cst_5 : f32 to vector<8x256xf32>
    %8 = arith.maximumf %6, %7 : vector<8x256xf32>
    %9 = arith.truncf %8 : vector<8x256xf32> to vector<8x256xbf16>
    %c0_6 = arith.constant 0 : index
    %c0_7 = arith.constant 0 : index
    %10 = vector.load %arg4[%c0_6, %c0_7] : memref<256x128xbf16, #tpu.memory_space<vmem>>, vector<256x128xbf16>
    %cst_8 = arith.constant dense<0.000000e+00> : vector<8x128xf32>
    %11 = tpu.matmul %9, %10, %cst_8 {dimension_numbers = #tpu.dot_dimension_numbers<[1], [0], [0], [1], [0, 0, 1, 1], [], []>} : vector<8x256xbf16>, vector<256x128xbf16>, vector<8x128xf32> -> vector<8x128xf32>
    %c0_9 = arith.constant 0 : index
    %c0_10 = arith.constant 0 : index
    %12 = vector.load %arg5[%c0_9, %c0_10] : memref<1x128xf32, #tpu.memory_space<vmem>>, vector<1x128xf32>
    %13 = vector.broadcast %12 : vector<1x128xf32> to vector<8x128xf32>
    %14 = arith.addf %11, %13 : vector<8x128xf32>
    %cst_11 = arith.constant 0.000000e+00 : f32
    %15 = vector.broadcast %cst_11 : f32 to vector<8x128xf32>
    %16 = arith.maximumf %14, %15 : vector<8x128xf32>
    %17 = arith.truncf %16 : vector<8x128xf32> to vector<8x128xbf16>
    %c0_12 = arith.constant 0 : index
    %c0_13 = arith.constant 0 : index
    %18 = vector.load %arg6[%c0_12, %c0_13] : memref<128x128xbf16, #tpu.memory_space<vmem>>, vector<128x128xbf16>
    %cst_14 = arith.constant dense<0.000000e+00> : vector<8x128xf32>
    %19 = tpu.matmul %17, %18, %cst_14 {dimension_numbers = #tpu.dot_dimension_numbers<[1], [0], [0], [1], [0, 0, 1, 1], [], []>} : vector<8x128xbf16>, vector<128x128xbf16>, vector<8x128xf32> -> vector<8x128xf32>
    %c0_15 = arith.constant 0 : index
    %c0_16 = arith.constant 0 : index
    %20 = vector.load %arg7[%c0_15, %c0_16] : memref<1x128xf32, #tpu.memory_space<vmem>>, vector<1x128xf32>
    %21 = vector.broadcast %20 : vector<1x128xf32> to vector<8x128xf32>
    %22 = arith.addf %19, %21 : vector<8x128xf32>
    %cst_17 = arith.constant 0.000000e+00 : f32
    %23 = vector.broadcast %cst_17 : f32 to vector<8x128xf32>
    %24 = arith.maximumf %22, %23 : vector<8x128xf32>
    %25 = arith.truncf %24 : vector<8x128xf32> to vector<8x128xbf16>
    %c0_18 = arith.constant 0 : index
    %c0_19 = arith.constant 0 : index
    %26 = vector.load %arg8[%c0_18, %c0_19] : memref<128x128xbf16, #tpu.memory_space<vmem>>, vector<128x128xbf16>
    %cst_20 = arith.constant dense<0.000000e+00> : vector<8x128xf32>
    %27 = tpu.matmul %25, %26, %cst_20 {dimension_numbers = #tpu.dot_dimension_numbers<[1], [0], [0], [1], [0, 0, 1, 1], [], []>} : vector<8x128xbf16>, vector<128x128xbf16>, vector<8x128xf32> -> vector<8x128xf32>
    %c0_21 = arith.constant 0 : index
    %c0_22 = arith.constant 0 : index
    %28 = vector.load %arg9[%c0_21, %c0_22] : memref<1x128xf32, #tpu.memory_space<vmem>>, vector<1x128xf32>
    %29 = vector.broadcast %28 : vector<1x128xf32> to vector<8x128xf32>
    %30 = arith.addf %27, %29 : vector<8x128xf32>
    %31 = arith.truncf %30 : vector<8x128xf32> to vector<8x128xbf16>
    %c0_23 = arith.constant 0 : index
    %c0_24 = arith.constant 0 : index
    %32 = vector.load %arg10[%c0_23, %c0_24] : memref<8x128xbf16, #tpu.memory_space<vmem>>, vector<8x128xbf16>
    tpu.vector_store %arg10[%c0_23, %c0_24], %31 {strides = array<i32>} : memref<8x128xbf16, #tpu.memory_space<vmem>>, vector<8x128xbf16>,
    return
  }
  func.func @transform_0(%arg0: i32) -> (i32, i32) {
    %c0_i32 = arith.constant 0 : i32
    %c0_i32_0 = arith.constant 0 : i32
    return %arg0, %c0_i32 : i32, i32
  }
  func.func @transform_1(%arg0: i32) -> (i32, i32) {
    %c0_i32 = arith.constant 0 : i32
    %c0_i32_0 = arith.constant 0 : i32
    %c0_i32_1 = arith.constant 0 : i32
    return %c0_i32, %c0_i32_0 : i32, i32
  }
  func.func @transform_2(%arg0: i32) -> (i32, i32) {
    %c0_i32 = arith.constant 0 : i32
    %c0_i32_0 = arith.constant 0 : i32
    %c0_i32_1 = arith.constant 0 : i32
    return %c0_i32, %c0_i32_0 : i32, i32
  }
  func.func @transform_3(%arg0: i32) -> (i32, i32) {
    %c0_i32 = arith.constant 0 : i32
    %c0_i32_0 = arith.constant 0 : i32
    %c0_i32_1 = arith.constant 0 : i32
    return %c0_i32, %c0_i32_0 : i32, i32
  }
  func.func @transform_4(%arg0: i32) -> (i32, i32) {
    %c0_i32 = arith.constant 0 : i32
    %c0_i32_0 = arith.constant 0 : i32
    %c0_i32_1 = arith.constant 0 : i32
    return %c0_i32, %c0_i32_0 : i32, i32
  }
  func.func @transform_5(%arg0: i32) -> (i32, i32) {
    %c0_i32 = arith.constant 0 : i32
    %c0_i32_0 = arith.constant 0 : i32
    %c0_i32_1 = arith.constant 0 : i32
    return %c0_i32, %c0_i32_0 : i32, i32
  }
  func.func @transform_6(%arg0: i32) -> (i32, i32) {
    %c0_i32 = arith.constant 0 : i32
    %c0_i32_0 = arith.constant 0 : i32
    %c0_i32_1 = arith.constant 0 : i32
    return %c0_i32, %c0_i32_0 : i32, i32
  }
  func.func @transform_7(%arg0: i32) -> (i32, i32) {
    %c0_i32 = arith.constant 0 : i32
    %c0_i32_0 = arith.constant 0 : i32
    %c0_i32_1 = arith.constant 0 : i32
    return %c0_i32, %c0_i32_0 : i32, i32
  }
  func.func @transform_8(%arg0: i32) -> (i32, i32) {
    %c0_i32 = arith.constant 0 : i32
    %c0_i32_0 = arith.constant 0 : i32
    %c0_i32_1 = arith.constant 0 : i32
    return %c0_i32, %c0_i32_0 : i32, i32
  }
  func.func @transform_9(%arg0: i32) -> (i32, i32) {
    %c0_i32 = arith.constant 0 : i32
    %c0_i32_0 = arith.constant 0 : i32
    return %arg0, %c0_i32 : i32, i32
  }
}

</mosaic_0001>

<bundles_post_ra>
// kernel: tpu_custom_call.1
= control target key start
LH: loop header
LB: loop body
LE: loop exit
PB: predicated region body
PF: predicated region fallthrough
CT: control target
= control target key end

     0   :  { %14 = vsyncpa [#allocation3], 0  ;;  %s1438_s0 = inlined_call_operand.hbm [shape: f32[8,300], index: 0, kind: input, shape index: {}]   ;;  %s1439_s1 = inlined_call_operand.hbm [shape: bf16[300,256], index: 1, kind: input, shape index: {}]   ;;  %s1440_s2 = inlined_call_operand.vmem [shape: f32[1,256], index: 2, kind: input, shape index: {}]   ;;  %s1441_s3 = inlined_call_operand.hbm [shape: bf16[256,128], index: 3, kind: input, shape index: {}]   ;;  %s1442_s4 = inlined_call_operand.vmem [shape: f32[1,128], index: 4, kind: input, shape index: {}]   ;;  %s1443_s5 = inlined_call_operand.hbm [shape: bf16[128,128], index: 5, kind: input, shape index: {}]   ;;  %s1444_s6 = inlined_call_operand.vmem [shape: f32[1,128], index: 6, kind: input, shape index: {}]   ;;  %s1445_s7 = inlined_call_operand.hbm [shape: bf16[128,128], index: 7, kind: input, shape index: {}]   ;;  %s1446_s8 = inlined_call_operand.vmem [shape: f32[1,128], index: 8, kind: input, shape index: {}]   ;;  %s1447_s9 = inlined_call_operand.hbm [shape: bf16[8,128], index: 9, kind: output, shape index: {}]  }
   0x1   :  { %15 = vsyncpa [#allocation6], 0 }
   0x2   :  { %16 = vsyncpa [#allocation9], 0 }
   0x3   :  { %17 = vsyncpa [#allocation4], 0  ;;  %s1264_s30 = smov [#allocation5]   ;;  %s1124_s13 = scalar_lea.hbm %s1439_s1, 4864 }
   0x4   :  { %s33_s10 = sshll.u32 %s1264_s30, 4  ;;  %p1125_p0 = scmp.ne.s32.totalorder %s1439_s1, %s1124_s13  ;;  %s34_s10 = int_to_ptr.vmem [resolvable:$true] %s33_s10 }
   0x5   :  { %p1128_p1 = scmp.lt.u32.totalorder %s1124_s13, %s1439_s1 }
   0x7   :  { %p1130_p2 = pnand %p1128_p1, %p1125_p0 }
   0x9   :  { %1133 = shalt.err (!%p1130_p2)
}
   0xa   :  { %s1134_s18 = scalar_lea.vmem %s34_s10, 4864  ;;  %p1139_p4 = scmp.lt.s32.totalorder %s34_s10, %s34_s10 }
   0xb   :  { %p1135_p3 = scmp.ne.s32.totalorder %s34_s10, %s1134_s18  ;;  %p1140_p5 = scmp.lt.s32.totalorder %s1134_s18, %s1134_s18 }
   0xd   :  { %p1141_p6 = por %p1140_p5, %p1139_p4 }
   0xf   :  { %p1142_p7 = pnand %p1141_p6, %p1135_p3 }
  0x11   :  { %1145 = shalt.err (!%p1142_p7)
}
  0x12   :  { %s1265_s19 = smov 128   ;;  %s1266_s20 = smov 8  }
  0x13   :  { %39 = dma.hbm_to_vmem [thread:$0]  %s1439_s1, 4864, %s34_s10, [#allocation6], %s1265_s19, %s1265_s19, %s1266_s20  }
  0x14   :  { %s1267_s23 = smov [#allocation8]   ;;  %s1268_s25 = smov [#allocation2]  }
  0x15   :  { %s61_s24 = sshll.u32 %s1267_s23, 4  ;;  %s24_s26 = sshll.u32 %s1268_s25, 4  ;;  %s62_s24 = int_to_ptr.vmem [resolvable:$true] %s61_s24  ;;  %s25_s26 = int_to_ptr.vmem [resolvable:$true] %s24_s26 }
  0x16   :  { %s1146_s29 = scalar_lea.hbm %s1443_s5, 1024 }
  0x17   :  { %p1147_p8 = scmp.ne.s32.totalorder %s1443_s5, %s1146_s29  ;;  %p1150_p9 = scmp.lt.u32.totalorder %s1146_s29, %s1443_s5 }
  0x19   :  { %p1152_p10 = pnand %p1150_p9, %p1147_p8 }
  0x1b   :  { %1155 = shalt.err (!%p1152_p10)
}
  0x1c   :  { %s1156_s1 = scalar_lea.vmem %s62_s24, 1024  ;;  %p1161_p12 = scmp.lt.s32.totalorder %s62_s24, %s62_s24 }
  0x1d   :  { %p1157_p11 = scmp.ne.s32.totalorder %s62_s24, %s1156_s1  ;;  %p1162_p13 = scmp.lt.s32.totalorder %s1156_s1, %s1156_s1 }
  0x1f   :  { %p1163_p0 = por %p1162_p13, %p1161_p12 }
  0x21   :  { %p1164_p1 = pnand %p1163_p0, %p1157_p11 }
  0x23   :  { %1167 = shalt.err (!%p1164_p1)
}
  0x24   :  { %s1269_s10 = smov 64   ;;  %s1270_s14 = smov 4  }
  0x25   :  { %67 = dma.hbm_to_vmem [thread:$0]  %s1443_s5, 1024, %s62_s24, [#allocation9], %s1269_s10, %s1269_s10, %s1270_s14  }
  0x26   :  { %s1168_s19 = scalar_lea.hbm %s1438_s0, 384 }
  0x27   :  { %p1169_p2 = scmp.ne.s32.totalorder %s1438_s0, %s1168_s19  ;;  %p1172_p3 = scmp.lt.u32.totalorder %s1168_s19, %s1438_s0 }
  0x29   :  { %p1174_p4 = pnand %p1172_p3, %p1169_p2 }
  0x2b   :  { %1177 = shalt.err (!%p1174_p4)
}
  0x2c   :  { %s1178_s25 = scalar_lea.vmem %s25_s26, 384  ;;  %p1183_p6 = scmp.lt.s32.totalorder %s25_s26, %s25_s26 }
  0x2d   :  { %p1179_p5 = scmp.ne.s32.totalorder %s25_s26, %s1178_s25  ;;  %p1184_p7 = scmp.lt.s32.totalorder %s1178_s25, %s1178_s25 }
  0x2f   :  { %p1185_p8 = por %p1184_p7, %p1183_p6 }
  0x31   :  { %p1186_p9 = pnand %p1185_p8, %p1179_p5 }
  0x33   :  { %1189 = shalt.err (!%p1186_p9)
}
  0x34   :  { %27 = dma.hbm_to_vmem [thread:$0]  %s1438_s0, 384, %s25_s26, [#allocation3]  }
  0x35   :  { %s1271_s27 = smov [#allocation7]   ;;  %s1272_s29 = smov [#allocation10]  }
  0x36   :  { %s47_s28 = sshll.u32 %s1271_s27, 4  ;;  %s75_s30 = sshll.u32 %s1272_s29, 4  ;;  %s48_s28 = int_to_ptr.vmem [resolvable:$true] %s47_s28  ;;  %s76_s30 = int_to_ptr.vmem [resolvable:$true] %s75_s30 }
  0x37   :  { %s1190_s13 = scalar_lea.hbm %s1441_s3, 2048 }
  0x38   :  { %p1191_p10 = scmp.ne.s32.totalorder %s1441_s3, %s1190_s13  ;;  %p1194_p11 = scmp.lt.u32.totalorder %s1190_s13, %s1441_s3 }
  0x3a   :  { %p1196_p12 = pnand %p1194_p11, %p1191_p10 }
  0x3c   :  { %1199 = shalt.err (!%p1196_p12)
}
  0x3d   :  { %s1200_s0 = scalar_lea.vmem %s48_s28, 2048  ;;  %p1205_p0 = scmp.lt.s32.totalorder %s48_s28, %s48_s28 }
  0x3e   :  { %p1201_p13 = scmp.ne.s32.totalorder %s48_s28, %s1200_s0  ;;  %p1206_p1 = scmp.lt.s32.totalorder %s1200_s0, %s1200_s0 }
  0x40   :  { %p1207_p2 = por %p1206_p1, %p1205_p0 }
  0x42   :  { %p1208_p3 = pnand %p1207_p2, %p1201_p13 }
  0x44   :  { %1211 = shalt.err (!%p1208_p3)
}
  0x45   :  { %53 = dma.hbm_to_vmem [thread:$0]  %s1441_s3, 2048, %s48_s28, [#allocation6], %s1269_s10, %s1269_s10, %s1270_s14  }
  0x46   :  { %s1212_s21 = scalar_lea.hbm %s1445_s7, 1024 }
  0x47   :  { %p1213_p4 = scmp.ne.s32.totalorder %s1445_s7, %s1212_s21  ;;  %p1216_p5 = scmp.lt.u32.totalorder %s1212_s21, %s1445_s7 }
  0x49   :  { %p1218_p6 = pnand %p1216_p5, %p1213_p4 }
  0x4b   :  { %1221 = shalt.err (!%p1218_p6)
}
  0x4c   :  { %s1222_s24 = scalar_lea.vmem %s76_s30, 1024  ;;  %p1227_p8 = scmp.lt.s32.totalorder %s76_s30, %s76_s30 }
  0x4d   :  { %p1223_p7 = scmp.ne.s32.totalorder %s76_s30, %s1222_s24  ;;  %p1228_p9 = scmp.lt.s32.totalorder %s1222_s24, %s1222_s24 }
  0x4f   :  { %p1229_p10 = por %p1228_p9, %p1227_p8 }
  0x51   :  { %p1230_p11 = pnand %p1229_p10, %p1223_p7 }
  0x53   :  { %1233 = shalt.err (!%p1230_p11)
}
  0x54   :  { %81 = dma.hbm_to_vmem [thread:$0]  %s1445_s7, 1024, %s76_s30, [#allocation9], %s1269_s10, %s1269_s10, %s1270_s14  }
  0x55   :  { %1256 = dma.done.wait [#allocation3], 384  }
  0x56   :  { %1257 = vsyncadd [#allocation3], 4294966912 }
  0x57   :  { %1258 = dma.done.wait [#allocation6], 6912  }
  0x58   :  { %1259 = vsyncadd [#allocation6], 4294960384 }
  0x59   :  { %1260 = dma.done.wait [#allocation9], 2048  }
  0x5a   :  { %1261 = vsyncadd [#allocation9], 4294965248  ;;  %v1035_v0 = vld [vmem:[#allocation5 + $0x4] ss:$8 sps:$4 sm:$0xff]   ;;  %v1037_v1 = vld [vmem:[#allocation5] ss:$8 sps:$4 sm:$0xff]   ;;  %v146_v63 = vlaneseq }
  0x5b   :  { %355 = vmatprep.subr.bf16.mxu0 %v1035_v0  ;;  %v1038_v2 = vld [vmem:[#allocation5 + $0x14] ss:$8 sps:$4 sm:$0xff]   ;;  %v1040_v3 = vld [vmem:[#allocation5 + $0x10] ss:$8 sps:$4 sm:$0xff]   ;;  %v1041_v4 = vld [vmem:[#allocation5 + $0x24] ss:$8 sps:$4 sm:$0xff]  }
  0x5c   :  { %356 = vmatpush1.bf16.msra.mxu0 %v1037_v1  ;;  %v1043_v5 = vld [vmem:[#allocation5 + $0x20] ss:$8 sps:$4 sm:$0xff]   ;;  %v1044_v6 = vld [vmem:[#allocation5 + $0x34] ss:$8 sps:$4 sm:$0xff]   ;;  %v1046_v7 = vld [vmem:[#allocation5 + $0x30] ss:$8 sps:$4 sm:$0xff]  }
  0x5d   :  { %357 = vmatprep.subr.bf16.mxu0 %v1038_v2  ;;  %v1047_v8 = vld [vmem:[#allocation5 + $0x44] ss:$8 sps:$4 sm:$0xff]   ;;  %v1049_v9 = vld [vmem:[#allocation5 + $0x40] ss:$8 sps:$4 sm:$0xff]   ;;  %v1050_v10 = vld [vmem:[#allocation5 + $0x54] ss:$8 sps:$4 sm:$0xff]  }
  0x5e   :  { %v1052_v11 = vld [vmem:[#allocation5 + $0x50] ss:$8 sps:$4 sm:$0xff]   ;;  %v1053_v12 = vld [vmem:[#allocation5 + $0x64] ss:$8 sps:$4 sm:$0xff]   ;;  %v1055_v15 = vld [vmem:[#allocation5 + $0x60] ss:$8 sps:$4 sm:$0xff]  }
  0x5f   :  { %v101_v13 = vld [vmem:[#allocation2 + $0x8] sm:$0xff]  ;;  %v1059_v18 = vld [vmem:[#allocation5 + $0x84] ss:$8 sps:$4 sm:$0xff]   ;;  %v1061_v21 = vld [vmem:[#allocation5 + $0x80] ss:$8 sps:$4 sm:$0xff]   ;;  %v1273_v52 = vmov 0  }
  0x60   :  { %358 = vmatpush1.bf16.msra.mxu0 %v1040_v3  ;;  %v104_v14 = vpack.c.bf16 %v101_v13, %v101_v13  ;;  %v1056_v16 = vld [vmem:[#allocation5 + $0x74] ss:$8 sps:$4 sm:$0xff]   ;;  %v1058_v17 = vld [vmem:[#allocation5 + $0x70] ss:$8 sps:$4 sm:$0xff]   ;;  %v1096_v24 = vld [vmem:[#allocation7 + $0x50] sm:$0xff]   ;;  %vm348_vm0 = vcmask 1045504  }
  0x61   :  { %359 = vmatprep.subr.bf16.mxu0 %v1041_v4  ;;  %v1092_v19 = vld [vmem:[#allocation7 + $0x40] sm:$0xff]   ;;  %v1094_v22 = vld [vmem:[#allocation7 + $0x48] sm:$0xff]   ;;  %v1097_v27 = vld [vmem:[#allocation7 + $0x10] sm:$0xff]   ;;  %vm344_vm1 = vcmask 359424   ;;  %v1274_v62 = vmov 0.0   ;;  %v147_v0 = vshrl.u32 %v146_v63, 7 }
  0x62   :  { %387 = vmatprep.mubr.bf16.mxu0 %v104_v14  ;;  %936 = vmatprep.subr.bf16.mxu1 %v1092_v19  ;;  %v1093_v20 = vld [vmem:[#allocation7] sm:$0xff]   ;;  %v1095_v23 = vld [vmem:[#allocation7 + $0x8] sm:$0xff]   ;;  %v1098_v28 = vld [vmem:[#allocation7 + $0x58] sm:$0xff]   ;;  %vm1275_vm2 = vmmov 0   ;;  %s1276_s11 = smov [#allocation11]  }
  0x63   :  { %937 = vmatpush3.bf16.msra.mxu1 %v1093_v20  ;;  %v1062_v25 = vld [vmem:[#allocation5 + $0x94] ss:$8 sps:$4 sm:$0xff]   ;;  %v1064_v26 = vld [vmem:[#allocation5 + $0x90] ss:$8 sps:$4 sm:$0xff]   ;;  %v1065_v29 = vld [vmem:[#allocation5 + $0xa4] ss:$8 sps:$4 sm:$0xff]  }
  0x64   :  { %360 = vmatpush1.bf16.msra.mxu0 %v1043_v5  ;;  %938 = vmatprep.subr.bf16.mxu1 %v1094_v22  ;;  %v1067_v30 = vld [vmem:[#allocation5 + $0xa0] ss:$8 sps:$4 sm:$0xff]   ;;  %v1068_v31 = vld [vmem:[#allocation5 + $0xb4] ss:$8 sps:$4 sm:$0xff]   ;;  %v1070_v35 = vld [vmem:[#allocation5 + $0xb0] ss:$8 sps:$4 sm:$0xff]  }
  0x65   :  { %361 = vmatprep.subr.bf16.mxu0 %v1044_v6  ;;  %v1099_v32 = vld [vmem:[#allocation7 + $0x18] sm:$0xff]   ;;  %v1100_v33 = vld [vmem:[#allocation7 + $0x60] sm:$0xff]   ;;  %v1102_v36 = vld [vmem:[#allocation7 + $0x68] sm:$0xff]   ;;  %v148_v1 = vsub.s32 0, %v147_v0  ;;  %v152_v3 = vsub.s32 1, %v147_v0  ;;  %s850_s12 = sshll.u32 %s1276_s11, 4  ;;  %s851_s12 = int_to_ptr.vmem [resolvable:$true] %s850_s12 }
  0x66   :  { %v1101_v34 = vld [vmem:[#allocation7 + $0x20] sm:$0xff]   ;;  %v1071_v37 = vld [vmem:[#allocation5 + $0xc4] ss:$8 sps:$4 sm:$0xff]   ;;  %v1103_v38 = vld [vmem:[#allocation7 + $0x28] sm:$0xff]   ;;  %p1239_p13 = scmp.lt.s32.totalorder %s851_s12, %s851_s12 }
  0x67   :  { %939 = vmatpush3.bf16.msra.mxu1 %v1095_v23  ;;  %v1073_v39 = vld [vmem:[#allocation5 + $0xc0] ss:$8 sps:$4 sm:$0xff]   ;;  %v1074_v40 = vld [vmem:[#allocation5 + $0xd4] ss:$8 sps:$4 sm:$0xff]   ;;  %v1076_v41 = vld [vmem:[#allocation5 + $0xd0] ss:$8 sps:$4 sm:$0xff]  }
  0x68   :  { %362 = vmatpush1.bf16.msra.mxu0 %v1046_v7  ;;  %940 = vmatprep.subr.bf16.mxu1 %v1096_v24  ;;  %v1077_v42 = vld [vmem:[#allocation5 + $0xe4] ss:$8 sps:$4 sm:$0xff]   ;;  %v1079_v43 = vld [vmem:[#allocation5 + $0xe0] ss:$8 sps:$4 sm:$0xff]   ;;  %v1080_v44 = vld [vmem:[#allocation5 + $0xf4] ss:$8 sps:$4 sm:$0xff]  }
  0x69   :  { %363 = vmatprep.subr.bf16.mxu0 %v1047_v8  ;;  %v1082_v45 = vld [vmem:[#allocation5 + $0xf0] ss:$8 sps:$4 sm:$0xff]   ;;  %v100_v46 = vld [vmem:[#allocation2] sm:$0xff]  ;;  %v1088_v50 = vld [vmem:[#allocation5 + $0x114] ss:$8 sps:$4 sm:$0xff]  }
  0x6a   :  { %v1085_v47 = vld [vmem:[#allocation5 + $0x104] ss:$8 sps:$4 sm:$0xff]   ;;  %v103_v48 = vpack.c.bf16 %v100_v46, %v100_v46  ;;  %v1083_v49 = vld [vmem:[#allocation5 + $0x100] ss:$8 sps:$4 sm:$0xff]   ;;  %v1086_v51 = vld [vmem:[#allocation5 + $0x110] ss:$8 sps:$4 sm:$0xff]  }
  0x6b   :  { %941 = vmatpush3.bf16.msra.mxu1 %v1097_v27  ;;  %v1089_v53 = vld [vmem:[#allocation5 + $0x124] ss:$8 sps:$4 sm:$0x3f]   ;;  %v1091_v54 = vld [vmem:[#allocation5 + $0x120] ss:$8 sps:$4 sm:$0x3f]  }
  0x6c   :  { %364 = vmatpush1.bf16.msra.mxu0 %v1049_v9  ;;  %942 = vmatprep.subr.bf16.mxu1 %v1098_v28  ;;  %v102_v55 = vld [vmem:[#allocation2 + $0x10] sm:$0xff]  ;;  %v350_v56 = vsel %vm348_vm0, %v1091_v54, 0  ;;  %v1104_v58 = vld [vmem:[#allocation7 + $0x70] sm:$0xff]   ;;  %v1106_v60 = vld [vmem:[#allocation7 + $0x78] sm:$0xff]  }
  0x6d   :  { %365 = vmatprep.subr.bf16.mxu0 %v1050_v10  ;;  %v105_v57 = vpack.c.bf16 %v102_v55, %v102_v55  ;;  %v1105_v59 = vld [vmem:[#allocation7 + $0x30] sm:$0xff]   ;;  %v1107_v61 = vld [vmem:[#allocation7 + $0x38] sm:$0xff]   ;;  %v1112_v20 = vld [vmem:[#allocation8 + $0x20] sm:$0xff]  }
  0x6e   :  { %v144_v2 = vld [vmem:[%s1440_s2] sm:$0x3]  ;;  %v1114_v22 = vld [vmem:[#allocation8 + $0x30] sm:$0xff]  }
  0x6f   :  { %943 = vmatpush3.bf16.msra.mxu1 %v1099_v32  ;;  %v149_v4 = vrot.slane %v144_v2, %v148_v1  ;;  %v153_v5 = vrot.slane %v144_v2, %v152_v3  ;;  %v1111_v19 = vld [vmem:[#allocation8 + $0x18] sm:$0xff]   ;;  %v1116_v32 = vld [vmem:[#allocation10] sm:$0xff]  }
  0x70   :  { %366 = vmatpush1.bf16.msra.mxu0 %v1052_v11  ;;  %944 = vmatprep.subr.bf16.mxu1 %v1100_v33  ;;  %v1115_v23 = vld [vmem:[#allocation8 + $0x38] sm:$0xff]  }
  0x71   :  { %367 = vmatprep.subr.bf16.mxu0 %v1053_v12 }
  0x73   :  { %945 = vmatpush3.bf16.msra.mxu1 %v1101_v34  ;;  %v1117_v34 = vld [vmem:[#allocation10 + $0x8] sm:$0xff]  }
  0x74   :  { %368 = vmatpush1.bf16.msra.mxu0 %v1055_v15  ;;  %946 = vmatprep.subr.bf16.mxu1 %v1102_v36  ;;  %v1108_v15 = vld [vmem:[#allocation8] sm:$0xff]   ;;  %v1119_v36 = vld [vmem:[#allocation10 + $0x18] sm:$0xff]  }
  0x75   :  { %369 = vmatprep.subr.bf16.mxu0 %v1056_v16 }
  0x77   :  { %947 = vmatpush3.bf16.msra.mxu1 %v1103_v38  ;;  %v1121_v38 = vld [vmem:[#allocation10 + $0x28] sm:$0xff]  }
  0x78   :  { %370 = vmatpush1.bf16.msra.mxu0 %v1058_v17  ;;  %948 = vmatprep.subr.bf16.mxu1 %v1104_v58  ;;  %v1109_v17 = vld [vmem:[#allocation8 + $0x8] sm:$0xff]  }
  0x79   :  { %371 = vmatprep.subr.bf16.mxu0 %v1059_v18  ;;  %v1110_v18 = vld [vmem:[#allocation8 + $0x10] sm:$0xff]  }
  0x7b   :  { %949 = vmatpush3.bf16.msra.mxu1 %v1105_v59 }
  0x7c   :  { %372 = vmatpush1.bf16.msra.mxu0 %v1061_v21  ;;  %950 = vmatprep.subr.bf16.mxu1 %v1106_v60  ;;  %v1113_v21 = vld [vmem:[#allocation8 + $0x28] sm:$0xff]  }
  0x7d   :  { %373 = vmatprep.subr.bf16.mxu0 %v1062_v25  ;;  %v901_v25 = vld [vmem:[%s1442_s4] ss:$0 sm:$0xff] }
  0x7f   :  { %951 = vmatpush3.bf16.msra.mxu1 %v1107_v61 }
  0x80   :  { %374 = vmatpush1.bf16.msra.mxu0 %v1064_v26  ;;  %976 = vmatprep.subr.bf16.mxu1 %v1274_v62 }
  0x81   :  { %375 = vmatprep.subr.bf16.mxu0 %v1065_v29 }
  0x84   :  { %376 = vmatpush1.bf16.msra.mxu0 %v1067_v30 }
  0x85   :  { %377 = vmatprep.subr.bf16.mxu0 %v1068_v31 }
  0x88   :  { %378 = vmatpush1.bf16.msra.mxu0 %v1070_v35  ;;  %v1118_v35 = vld [vmem:[#allocation10 + $0x10] sm:$0xff]  }
  0x89   :  { %379 = vmatprep.subr.bf16.mxu0 %v1071_v37  ;;  %v1120_v37 = vld [vmem:[#allocation10 + $0x20] sm:$0xff]  }
  0x8c   :  { %380 = vmatpush1.bf16.msra.mxu0 %v1073_v39  ;;  %v1122_v39 = vld [vmem:[#allocation10 + $0x30] sm:$0xff]  }
  0x8d   :  { %381 = vmatprep.subr.bf16.mxu0 %v1074_v40  ;;  %v1123_v40 = vld [vmem:[#allocation10 + $0x38] sm:$0xff]  }
  0x90   :  { %382 = vmatpush1.bf16.msra.mxu0 %v1076_v41  ;;  %v918_v41 = vld [vmem:[%s1444_s6] ss:$0 sm:$0xff]  ;;  %s1234_s6 = scalar_lea.vmem %s851_s12, 64 }
  0x91   :  { %383 = vmatprep.subr.bf16.mxu0 %v1077_v42  ;;  %p1235_p12 = scmp.ne.s32.totalorder %s851_s12, %s1234_s6  ;;  %p1240_p0 = scmp.lt.s32.totalorder %s1234_s6, %s1234_s6 }
  0x93   :  { %p1241_p1 = por %p1240_p0, %p1239_p13 }
  0x94   :  { %384 = vmatpush1.bf16.msra.mxu0 %v1079_v43 }
  0x95   :  { %385 = vmatprep.subr.bf16.mxu0 %v1080_v44  ;;  %p1242_p2 = pnand %p1241_p1, %p1235_p12 }
  0x98   :  { %386 = vmatpush1.bf16.msra.mxu0 %v1082_v45 }
  0x99   :  { %396 = vmatprep.subr.bf16.mxu0 %v1085_v47 }
  0x9b   :  { %388 = vmatmul.mubr.bf16.vlgmr.msra.gmra.mrb[0].mxu0 %v103_v48 }
  0x9c   :  { %397 = vmatpush1.bf16.msra.mxu0 %v1083_v49  ;;  %428 = vmatprep.mubr.bf16.mxu0 %v1273_v52  ;;  %v927_v49 = vld [vmem:[%s1446_s8] ss:$0 sm:$0xff] }
  0x9d   :  { %398 = vmatprep.subr.bf16.mxu0 %v1088_v50 }
  0xa0   :  { %399 = vmatpush1.bf16.msra.mxu0 %v1086_v51 }
  0xa1   :  { %899 = vmatprep.subr.msk.bf16.mxu0 %vm348_vm0, %v1089_v53 }
  0xa4   :  { %401 = vmatpush1.bf16.msra.mxu0 %v350_v56 }
  0xa7   :  { %900 = vmatmul.mubr.msk.bf16.vlgmr.msra.gmra.mrb[0].mxu0 %vm344_vm1, %v105_v57 }
 0x17a   :  { %v430_v6 = vpop.f32.mrb[0].mxu0 }
 0x17b   :  { %v1016_v7 = vadd.f32 %v430_v6, %v149_v4  ;;  %v432_v8 = vpop.f32.mrb[1].mxu0 }
 0x17c   :  { %v1017_v9 = vadd.f32 %v432_v8, %v153_v5  ;;  %v434_v10 = vpop.f32.mrb[2].mxu0 }
 0x17d   :  { %v437_v11 = vmax.f32 %v1016_v7, 0.0  ;;  %v435_v12 = vpop.f32.mrb[3].mxu0 }
 0x17e   :  { %v438_v13 = vmax.f32 %v1017_v9, 0.0 }
 0x17f   :  { %v439_v16 = vpack.c.bf16 %v437_v11, %v437_v11 }
 0x180   :  { %v440_v14 = vpack.c.bf16 %v438_v13, %v438_v13 }
 0x182   :  { %608 = vmatprep.mubr.bf16.mxu1 %v440_v14 }
 0x183   :  { %609 = vmatmul.mubr.bf16.vlgmr.msra.gmra.mrb[0].mxu1 %v439_v16 }
 0x184   :  { %977 = vmatpush3.bf16.msra.mxu1 %v1108_v15  ;;  %992 = vmatprep.mubr.msk.bf16.mxu1 %vm1275_vm2, %v1274_v62 }
 0x185   :  { %978 = vmatprep.subr.bf16.mxu1 %v1274_v62 }
 0x188   :  { %979 = vmatpush3.bf16.msra.mxu1 %v1109_v17 }
 0x189   :  { %980 = vmatprep.subr.bf16.mxu1 %v1274_v62 }
 0x18c   :  { %981 = vmatpush3.bf16.msra.mxu1 %v1110_v18 }
 0x18d   :  { %982 = vmatprep.subr.bf16.mxu1 %v1274_v62 }
 0x190   :  { %983 = vmatpush3.bf16.msra.mxu1 %v1111_v19 }
 0x191   :  { %984 = vmatprep.subr.bf16.mxu1 %v1274_v62 }
 0x194   :  { %985 = vmatpush3.bf16.msra.mxu1 %v1112_v20 }
 0x195   :  { %986 = vmatprep.subr.bf16.mxu1 %v1274_v62 }
 0x198   :  { %987 = vmatpush3.bf16.msra.mxu1 %v1113_v21 }
 0x199   :  { %988 = vmatprep.subr.bf16.mxu1 %v1274_v62 }
 0x19c   :  { %989 = vmatpush3.bf16.msra.mxu1 %v1114_v22 }
 0x19d   :  { %990 = vmatprep.subr.bf16.mxu1 %v1274_v62 }
 0x1a0   :  { %991 = vmatpush3.bf16.msra.mxu1 %v1115_v23 }
 0x1a1   :  { %996 = vmatprep.subr.bf16.mxu1 %v1274_v62 }
 0x256   :  { %v952_v24 = vpop.f32.mrb[0].mxu1 }
 0x257   :  { %v953_v26 = vpop.f32.mrb[1].mxu1 }
 0x258   :  { %v954_v27 = vadd.f32 %v953_v26, %v952_v24  ;;  %v955_v28 = vpop.f32.mrb[2].mxu1 }
 0x259   :  { %v956_v29 = vpop.f32.mrb[3].mxu1 }
 0x25a   :  { %v611_v30 = vadd.f32 %v954_v27, %v901_v25 }
 0x25c   :  { %v616_v31 = vmax.f32 %v611_v30, 0.0 }
 0x25e   :  { %v617_v33 = vpack.c.bf16 %v616_v31, %v616_v31 }
 0x260   :  { %993 = vmatmul.mubr.bf16.vlgmr.msra.gmra.mrb[4].mxu1 %v617_v33 }
 0x261   :  { %997 = vmatpush3.bf16.msra.mxu1 %v1116_v32  ;;  %1012 = vmatprep.mubr.msk.bf16.mxu1 %vm1275_vm2, %v1274_v62 }
 0x262   :  { %998 = vmatprep.subr.bf16.mxu1 %v1274_v62 }
 0x265   :  { %999 = vmatpush3.bf16.msra.mxu1 %v1117_v34 }
 0x266   :  { %1000 = vmatprep.subr.bf16.mxu1 %v1274_v62 }
 0x269   :  { %1001 = vmatpush3.bf16.msra.mxu1 %v1118_v35 }
 0x26a   :  { %1002 = vmatprep.subr.bf16.mxu1 %v1274_v62 }
 0x26d   :  { %1003 = vmatpush3.bf16.msra.mxu1 %v1119_v36 }
 0x26e   :  { %1004 = vmatprep.subr.bf16.mxu1 %v1274_v62 }
 0x271   :  { %1005 = vmatpush3.bf16.msra.mxu1 %v1120_v37 }
 0x272   :  { %1006 = vmatprep.subr.bf16.mxu1 %v1274_v62 }
 0x275   :  { %1007 = vmatpush3.bf16.msra.mxu1 %v1121_v38 }
 0x276   :  { %1008 = vmatprep.subr.bf16.mxu1 %v1274_v62 }
 0x279   :  { %1009 = vmatpush3.bf16.msra.mxu1 %v1122_v39 }
 0x27a   :  { %1010 = vmatprep.subr.bf16.mxu1 %v1274_v62 }
 0x27d   :  { %1011 = vmatpush3.bf16.msra.mxu1 %v1123_v40 }
 0x333   :  { %v723_v42 = vpop.f32.mrb[4].mxu1 }
 0x334   :  { %v724_v43 = vadd.f32 %v918_v41, %v723_v42  ;;  %v994_v44 = vpop.f32.mrb[5].mxu1 }
 0x335   :  { %v726_v45 = vpop.f32.mrb[6].mxu1 }
 0x336   :  { %v729_v46 = vmax.f32 %v724_v43, 0.0  ;;  %v995_v47 = vpop.f32.mrb[7].mxu1 }
 0x338   :  { %v730_v48 = vpack.c.bf16 %v729_v46, %v729_v46 }
 0x33a   :  { %1013 = vmatmul.mubr.bf16.vlgmr.msra.gmra.mrb[8].mxu1 %v730_v48 }
 0x40d   :  { %v836_v50 = vpop.f32.mrb[8].mxu1 }
 0x40e   :  { %v837_v51 = vadd.f32 %v927_v49, %v836_v50  ;;  %v1014_v52 = vpop.f32.mrb[9].mxu1 }
 0x40f   :  { %v839_v53 = vpop.f32.mrb[10].mxu1 }
 0x410   :  { %v842_v54 = vpack.c.bf16 %v837_v51, %v837_v51  ;;  %v1015_v55 = vpop.f32.mrb[11].mxu1 }
 0x412   :  { %843 = vst [vmem:[#allocation11] sm:$0xf] %v842_v54 }
 0x413   :  { %1245 = shalt.err (!%p1242_p2)
}
 0x414   :  { %s1246_s8 = scalar_lea.hbm %s1447_s9, 64 }
 0x415   :  { %p1247_p3 = scmp.ne.s32.totalorder %s1447_s9, %s1246_s8  ;;  %p1250_p4 = scmp.lt.u32.totalorder %s1246_s8, %s1447_s9 }
 0x417   :  { %p1252_p5 = pnand %p1250_p4, %p1247_p3 }
 0x419   :  { %1255 = shalt.err (!%p1252_p5)
}
 0x41a   :  { %853 = dma.vmem_to_hbm [thread:$0]  %s851_s12, 64, %s1447_s9, [#allocation4]  }
 0x41b   :  { %1262 = dma.done.wait [#allocation4], 64  }
 0x41c   :  { %1263 = vsyncadd [#allocation4], 4294967232 }
 0x41d   :  { %857 = vsyncpa [#allocation3], 1 }
 0x41e   :  { %858 = vsyncpa [#allocation6], 1 }
 0x41f   :  { %859 = vsyncpa [#allocation9], 1 }
 0x420   :  { %860 = vsyncpa [#allocation4], 1 }

</bundles_post_ra>
